<compile_context>
chip_gen: v7x
topology: tpu7x:2x2x1
jax: 0.10.0
libtpu: 0.0.40
codegen_flags: <defaults>
</compile_context>

<pallas_src>
import functools
import math

import jax
import jax.numpy as jnp
from jax.experimental import pallas as pl
from jax.experimental.pallas import tpu as pltpu

_LANE_CANDIDATES = (512, 256, 128)   # widest lane-dense widths (multiples of 128)


def _swish_kernel(x_ref, o_ref, *, compute_dtype):
    """Elementwise lambda body: x * sigmoid(x) (swish).

    sigmoid via a single EUP transcendental: sigmoid(x) = 0.5*(1 + tanh(x/2)).
    """
    x = x_ref[...].astype(compute_dtype)
    sig = 0.5 * (jnp.tanh(0.5 * x) + 1.0)
    o_ref[...] = (x * sig).astype(o_ref.dtype)


def _round_up(x: int, m: int) -> int:
    return ((x + m - 1) // m) * m


def _device_generation() -> int:
    """Best-effort TPU generation (5/6/7); 0 if unknown (conservative)."""
    try:
        kind = jax.devices()[0].device_kind.lower()
    except Exception:
        return 0
    for g in (7, 6, 5):
        if f"v{g}" in kind:
            return g
    return 0


def _max_tile_rows(gen: int, lane: int, itemsize: int) -> int:
    """Largest row-tile so 2 bufs x (in + out) stay within scoped VMEM budget."""
    if gen >= 7:
        tile_budget = 8 << 20    # 8 MiB tile -> 32 MiB resident (vmem limit raised)
    elif gen == 6:
        tile_budget = 4 << 20    # 16 MiB resident, within the 32 MiB default
    else:
        tile_budget = 2 << 20    # v5e / unknown: 8 MiB resident, within 16 MiB
    lane_eff = _round_up(lane, 128)          # VMEM pads the lane dim to 128
    rows = tile_budget // (lane_eff * itemsize)
    return max(8, (rows // 8) * 8)


def lambda_module_forward(x: jax.Array) -> jax.Array:
    """Apply the realised lambda fn (swish) to an arbitrary-shaped tensor."""
    orig_shape = x.shape
    total = math.prod(orig_shape) if orig_shape else 1
    if total == 0:
        return x

    gen = _device_generation()
    itemsize = jnp.dtype(x.dtype).itemsize
    compute_dtype = (
        jnp.bfloat16 if (x.dtype == jnp.bfloat16 and gen >= 6) else jnp.float32
    )

    # ---- Present the tensor as a 2-D slab via a *free* (bitcast) reshape ----
    lane = next((c for c in _LANE_CANDIDATES if total % c == 0), None)
    if lane is not None:
        rows = total // lane
        x2d = x.reshape(rows, lane)
    else:
        # Ragged total: keep the original last dim as the lane axis.  No pad,
        # no post-slice; stores on a non-128-multiple last dim are masked.
        # TODO(synk): a fully lane-dense ragged path would need an in-kernel
        #             masked tail over a padded slab.
        if len(orig_shape) < 2:
            x2d = x.reshape(1, total)
        else:
            last = orig_shape[-1]
            x2d = x.reshape(total // last, last)
        rows, lane = x2d.shape

    # ---- Row tiling (generation-aware) ----
    max_rows = _max_tile_rows(gen, lane, itemsize)
    if rows <= max_rows:
        tile_rows = rows                      # single full block: fast path
    else:
        tile_rows = max_rows
        if gen >= 7:
            # Keep >= 4 grid steps so both v7x TensorCores get balanced work.
            while tile_rows > 64 and pl.cdiv(rows, tile_rows) < 4:
                tile_rows //= 2

    grid = (pl.cdiv(rows, tile_rows),)

    # Raise the scoped VMEM limit only when the big-tile (v7x) config needs it.
    lane_eff = _round_up(lane, 128)
    resident = 2 * 2 * _round_up(tile_rows, 8) * lane_eff * itemsize
    vmem_limit = (48 << 20) if resident > (24 << 20) else None

    out2d = pl.pallas_call(
        functools.partial(_swish_kernel, compute_dtype=compute_dtype),
        out_shape=jax.ShapeDtypeStruct(x2d.shape, x2d.dtype),
        grid=grid,
        in_specs=[pl.BlockSpec((tile_rows, lane), lambda i: (i, 0))],
        out_specs=pl.BlockSpec((tile_rows, lane), lambda i: (i, 0)),
        input_output_aliases={0: 0},          # in-place elementwise update
        compiler_params=pltpu.CompilerParams(
            dimension_semantics=("parallel",),  # independent tiles -> megacore
            vmem_limit_bytes=vmem_limit,
        ),
    )(x2d)

    return out2d.reshape(orig_shape)


def _reference(x: jax.Array) -> jax.Array:
    xf = x.astype(jnp.float32)
    return (xf * jax.nn.sigmoid(xf)).astype(x.dtype)


if __name__ == "__main__":
    key = jax.random.PRNGKey(0)

    # Small NCHW input consistent with a conv-style pipeline.
    x = jax.random.normal(key, (2, 4, 16, 16), dtype=jnp.float32)
    out = jax.block_until_ready(lambda_module_forward(x))
    ref = _reference(x)
    assert out.shape == x.shape
    assert out.dtype == x.dtype
    # tanh-based sigmoid vs jax.nn.sigmoid: tiny EUP rounding differences only.
    assert jnp.max(jnp.abs(out - ref)) < 1e-4

    # Second small, "ragged" NCHW shape (total not a multiple of 128) to
    # exercise the pad-free ragged path.
    key2 = jax.random.PRNGKey(1)
    x2 = jax.random.normal(key2, (2, 3, 7, 5), dtype=jnp.float32)
    out2 = jax.block_until_ready(lambda_module_forward(x2))
    ref2 = _reference(x2)
    assert out2.shape == x2.shape
    assert jnp.max(jnp.abs(out2 - ref2)) < 1e-4

    print("KERNEL_OK")
</pallas_src>

<mosaic_0001>
module attributes {stable_mosaic.version = 11 : i64} {
  func.func @_swish_kernel(%arg0: i32, %arg1: memref<4x512xf32, #tpu.memory_space<vmem>>, %arg2: memref<4x512xf32, #tpu.memory_space<vmem>>) attributes {dimension_semantics = [#tpu.dimension_semantics<parallel>], iteration_bounds = array<i64: 1>, scalar_prefetch = 0 : i64, scratch_operands = 0 : i64, tpu.core_type = #tpu.core_type<tc>, window_params = [{transform_indices = @transform_0, window_bounds = array<i64: 4, 512>}, {transform_indices = @transform_1, window_bounds = array<i64: 4, 512>}]} {
    %c0 = arith.constant 0 : index
    %c0_0 = arith.constant 0 : index
    %0 = vector.load %arg1[%c0, %c0_0] : memref<4x512xf32, #tpu.memory_space<vmem>>, vector<4x512xf32>
    %cst = arith.constant 5.000000e-01 : f32
    %1 = vector.broadcast %cst : f32 to vector<4x512xf32>
    %2 = arith.mulf %1, %0 : vector<4x512xf32>
    %3 = math.tanh %2 : vector<4x512xf32>
    %cst_1 = arith.constant 1.000000e+00 : f32
    %4 = vector.broadcast %cst_1 : f32 to vector<4x512xf32>
    %5 = arith.addf %3, %4 : vector<4x512xf32>
    %cst_2 = arith.constant 5.000000e-01 : f32
    %6 = vector.broadcast %cst_2 : f32 to vector<4x512xf32>
    %7 = arith.mulf %6, %5 : vector<4x512xf32>
    %8 = arith.mulf %0, %7 : vector<4x512xf32>
    %c0_3 = arith.constant 0 : index
    %c0_4 = arith.constant 0 : index
    %9 = vector.load %arg2[%c0_3, %c0_4] : memref<4x512xf32, #tpu.memory_space<vmem>>, vector<4x512xf32>
    tpu.vector_store %arg2[%c0_3, %c0_4], %8 {strides = array<i32>} : memref<4x512xf32, #tpu.memory_space<vmem>>, vector<4x512xf32>,
    return
  }
  func.func @transform_0(%arg0: i32) -> (i32, i32) {
    %c0_i32 = arith.constant 0 : i32
    %c0_i32_0 = arith.constant 0 : i32
    return %arg0, %c0_i32 : i32, i32
  }
  func.func @transform_1(%arg0: i32) -> (i32, i32) {
    %c0_i32 = arith.constant 0 : i32
    %c0_i32_0 = arith.constant 0 : i32
    return %arg0, %c0_i32 : i32, i32
  }
}

</mosaic_0001>

<bundles_post_ra>
// kernel: tpu_custom_call.1
= control target key start
LH: loop header
LB: loop body
LE: loop exit
PB: predicated region body
PF: predicated region fallthrough
CT: control target
= control target key end

     0   :  { %6 = vsyncpa [#allocation3], 0  ;;  %s140_s0 = inlined_call_operand.hbm [shape: f32[4,512], index: 0, kind: input, shape index: {}, may-alias: {0,1}]   ;;  %s141_s1 = inlined_call_operand.hbm [shape: f32[4,512], index: 1, kind: output, shape index: {}, may-alias: {0,1}]  }
   0x1   :  { %7 = vsyncpa [#allocation4], 0  ;;  %s104_s6 = smov [#allocation2]   ;;  %s56_s10 = scalar_lea.hbm %s140_s0, 256 }
   0x2   :  { %s14_s7 = sshll.u32 %s104_s6, 4  ;;  %p57_p0 = scmp.ne.s32.totalorder %s140_s0, %s56_s10  ;;  %s15_s7 = int_to_ptr.vmem [resolvable:$true] %s14_s7 }
   0x3   :  { %p60_p1 = scmp.lt.u32.totalorder %s56_s10, %s140_s0 }
   0x5   :  { %p62_p2 = pnand %p60_p1, %p57_p0 }
   0x7   :  { %65 = shalt.err (!%p62_p2)
}
   0x8   :  { %s66_s15 = scalar_lea.vmem %s15_s7, 256  ;;  %p71_p4 = scmp.lt.s32.totalorder %s15_s7, %s15_s7 }
   0x9   :  { %p67_p3 = scmp.ne.s32.totalorder %s15_s7, %s66_s15  ;;  %p72_p5 = scmp.lt.s32.totalorder %s66_s15, %s66_s15 }
   0xb   :  { %p73_p6 = por %p72_p5, %p71_p4 }
   0xd   :  { %p74_p7 = pnand %p73_p6, %p67_p3 }
   0xf   :  { %77 = shalt.err (!%p74_p7)
}
  0x10   :  { %17 = dma.hbm_to_vmem [thread:$0]  %s140_s0, 256, %s15_s7, [#allocation3]  }
  0x11   :  { %100 = dma.done.wait [#allocation3], 256  }
  0x12   :  { %101 = vsyncadd [#allocation3], 4294967040  ;;  %v21_v0 = vld [vmem:[#allocation2] sm:$0xff]  ;;  %v22_v1 = vld [vmem:[#allocation2 + $0x8] sm:$0xff]  ;;  %s105_s18 = smov [#allocation5]  }
  0x13   :  { %v23_v2 = vmul.f32 0.5, %v21_v0  ;;  %v24_v3 = vmul.f32 0.5, %v22_v1  ;;  %s41_s19 = sshll.u32 %s105_s18, 4  ;;  %s42_s19 = int_to_ptr.vmem [resolvable:$true] %s41_s19 }
  0x14   :  { %s78_s0 = scalar_lea.vmem %s42_s19, 256  ;;  %p83_p9 = scmp.lt.s32.totalorder %s42_s19, %s42_s19 }
  0x15   :  { %52 = vtanh.f32 %v23_v2  ;;  %p79_p8 = scmp.ne.s32.totalorder %s42_s19, %s78_s0  ;;  %p84_p10 = scmp.lt.s32.totalorder %s78_s0, %s78_s0 }
  0x16   :  { %54 = vtanh.f32 %v24_v3 }
  0x17   :  { %p85_p11 = por %p84_p10, %p83_p9 }
  0x19   :  { %p86_p12 = pnand %p85_p11, %p79_p8 }
  0x1f   :  { %v53_v4 = vpop.eup %52 }
  0x20   :  { %v55_v5 = vpop.eup %54  ;;  %v27_v6 = vadd.f32 1.0, %v53_v4 }
  0x21   :  { %v28_v7 = vadd.f32 1.0, %v55_v5 }
  0x22   :  { %v29_v8 = vmul.f32 0.5, %v27_v6 }
  0x23   :  { %v30_v9 = vmul.f32 0.5, %v28_v7 }
  0x24   :  { %v31_v10 = vmul.f32 %v29_v8, %v21_v0 }
  0x25   :  { %v32_v11 = vmul.f32 %v30_v9, %v22_v1 }
  0x26   :  { %33 = vst [vmem:[#allocation5] sm:$0xff] %v31_v10 }
  0x27   :  { %34 = vst [vmem:[#allocation5 + $0x8] sm:$0xff] %v32_v11 }
  0x28   :  { %89 = shalt.err (!%p86_p12)
}
  0x29   :  { %s90_s22 = scalar_lea.hbm %s141_s1, 256 }
  0x2a   :  { %p91_p13 = scmp.ne.s32.totalorder %s141_s1, %s90_s22  ;;  %p94_p0 = scmp.lt.u32.totalorder %s90_s22, %s141_s1 }
  0x2c   :  { %p96_p1 = pnand %p94_p0, %p91_p13 }
  0x2e   :  { %99 = shalt.err (!%p96_p1)
}
  0x2f   :  { %44 = dma.vmem_to_hbm [thread:$0]  %s42_s19, 256, %s141_s1, [#allocation4]  }
  0x30   :  { %102 = dma.done.wait [#allocation4], 256  }
  0x31   :  { %103 = vsyncadd [#allocation4], 4294967040 }
  0x32   :  { %48 = vsyncpa [#allocation3], 1 }
  0x33   :  { %49 = vsyncpa [#allocation4], 1 }

</bundles_post_ra>
